<compile_context>
chip_gen: v7x
topology: tpu7x:2x2x1
jax: 0.10.0
libtpu: 0.0.40
codegen_flags: <defaults>
</compile_context>

<pallas_src>
import jax
import jax.numpy as jnp
import numpy as np
from jax.experimental import pallas as pl
from jax.experimental.pallas import tpu as pltpu

# ----------------------------- problem sizes -------------------------------
B = 2          # batch
M = 8          # L1 sentence length
N = 8          # L2 sentence length
D = 32         # embed_dim
V1 = 128       # vocab_size_l1
V2 = 128       # vocab_size_l2
CONTEXT = True
H_DIM = 2 * D if CONTEXT else D


# ------------------------------- kernel ------------------------------------
def embedalign_kernel(
    l1_ref,      # [B, M]            i32   batch_l1 (token ids, 0 = padding)
    l2_ref,      # [B, N]            i32   batch_l2
    table_ref,   # [V1, D]           bf16  embedding table
    wls_ref,     # [H_DIM, 2D]       bf16  concat(w_loc, w_scale)
    w12_ref,     # [D, V1+V2]        bf16  concat(affine_l1.W, affine_l2.W)
    bias_ref,    # [1, V1+V2+2D]     f32   [b1 | b2 | b_loc | b_scale]
    eps_ref,     # [1, D]            f32   std-normal sample (reparam. trick)
    out_ref,     # [1, 128]          f32   lanes 0..2 = (loss, acc_l1, acc_l2)
):
    f32 = jnp.float32
    bf16 = jnp.bfloat16

    l1 = l1_ref[...]                              # [B, M]
    l2 = l2_ref[...]                              # [B, N]
    b, m = l1.shape
    _, n = l2.shape
    rows = b * m
    inv_b = f32(1.0 / b)

    l1_mask2 = (l1 > 0).astype(f32)               # [B, M]
    l2_mask2 = (l2 > 0).astype(f32)               # [B, N]
    total_l1 = jnp.sum(l1_mask2)
    total_l2 = jnp.sum(l2_mask2)
    len_b = jnp.sum(l1_mask2, axis=1, keepdims=True)   # [B, 1]

    # ---- in-kernel embedding gather: one-hot MXU matmul (bf16 feed, f32 acc)
    vid1 = jax.lax.broadcasted_iota(jnp.int32, (b, m, V1), 2)
    oh1 = (vid1 == l1[:, :, None]).astype(f32).reshape(rows, V1)    # [rows, V1]
    emb = jnp.dot(oh1.astype(bf16), table_ref[...],
                  preferred_element_type=f32)                        # [rows, D]
    # per-row l1 mask without a [B,M] -> [rows,1] relayout: token 0 == padding
    l1_mask_r = 1.0 - oh1[:, 0:1]                                    # [rows, 1]

    # ---- context + h (per-batch sublane sums; no glue outside the kernel)
    if CONTEXT:
        emb3 = emb.reshape(b, m, D)
        sums = jnp.sum(emb3, axis=1, keepdims=True)                  # [b, 1, D]
        ctx = ((sums - emb3) * f32(1.0 / (m - 1))).reshape(rows, D)
        h = jnp.concatenate([emb, ctx], axis=1)                      # [rows, H_DIM]
    else:
        h = emb

    # ---- inference net: ONE fused MXU push producing [loc | scale_pre]
    # TODO(synk): InferenceNet source not provided; implemented as
    #   z_loc = Linear(h) ; z_scale = softplus(Linear(h)).
    b_locsc = bias_ref[:, V1 + V2:]                                  # [1, 2D]
    locsc = jnp.dot(h.astype(bf16), wls_ref[...],
                    preferred_element_type=f32) + b_locsc            # [rows, 2D]
    z_loc = locsc[:, :D]                                             # [rows, D]
    z_scale = jax.nn.softplus(locsc[:, D:])                          # [rows, D]
    z = z_loc + z_scale * eps_ref[...]                               # [rows, D]

    # ---- fused output projections: ONE [rows,D] x [D,V1+V2] MXU push
    b12 = bias_ref[:, :V1 + V2]                                      # [1, V1+V2]
    logits12 = jnp.dot(z.astype(bf16), w12_ref[...],
                       preferred_element_type=f32) + b12             # [rows, V1+V2]
    logits1 = logits12[:, :V1]                                       # 128-aligned
    logits2 = logits12[:, V1:]

    # ---- l1 log-softmax + cross entropy (targets via the gather one-hot)
    mx1 = jnp.max(logits1, axis=-1, keepdims=True)
    e1 = jnp.exp(logits1 - mx1)
    logsm1 = logits1 - mx1 - jnp.log(jnp.sum(e1, axis=-1, keepdims=True))
    ce1_elem = -jnp.sum(oh1 * logsm1, axis=-1, keepdims=True)        # [rows, 1]
    ce1 = jnp.mean(ce1_elem) * total_l1 * inv_b     # mean-CE * mean(sent_len)

    # ---- l2 softmax + alignment mixture (per-batch sublane sums, exact div)
    mx2 = jnp.max(logits2, axis=-1, keepdims=True)
    e2 = jnp.exp(logits2 - mx2)
    cat2 = e2 / jnp.sum(e2, axis=-1, keepdims=True)                  # [rows, V2]
    p_sum = (cat2 * l1_mask_r).reshape(b, m, V2).sum(axis=1)         # [B, V2]
    p_row = p_sum / len_b                                            # [B, V2]

    # CrossEntropyLoss re-applies log_softmax to the probability mixture.
    mxp = jnp.max(p_row, axis=-1, keepdims=True)
    ep = jnp.exp(p_row - mxp)
    logsmp = p_row - mxp - jnp.log(jnp.sum(ep, axis=-1, keepdims=True))   # [B, V2]
    # 2-D CE: per-batch target counts (l2 one-hot summed over n) dot logsmp.
    vid2 = jax.lax.broadcasted_iota(jnp.int32, (b, n, V2), 2)
    cnt2 = jnp.sum((vid2 == l2[:, :, None]).astype(f32), axis=1)     # [B, V2]
    ce2 = -jnp.sum(cnt2 * logsmp) * f32(1.0 / (b * n)) * total_l2 * inv_b

    # ---- KL(q(z|x) || N(0, I))
    z_var = z_scale * z_scale
    kl = -0.5 * (1.0 + jnp.log(z_var) - z_loc * z_loc - z_var)       # [rows, D]
    kl = jnp.sum(jnp.sum(kl, axis=-1, keepdims=True) * l1_mask_r) * inv_b

    loss = ce1 + ce2 + kl

    # ---- accuracies (flat GLOBAL argmax, faithful to the torch code)
    big = jnp.int32(2 ** 30)
    rid1 = jax.lax.broadcasted_iota(jnp.int32, (rows, V1), 0)
    cid1 = jax.lax.broadcasted_iota(jnp.int32, (rows, V1), 1)
    flat1 = rid1 * V1 + cid1
    g1 = jnp.max(logsm1)       # argmax(softmax) == argmax(log_softmax) globally
    pred1 = jnp.min(jnp.where(logsm1 == g1, flat1, big))
    acc1 = jnp.sum((l1 == pred1).astype(f32) * l1_mask2) / total_l1

    bid2 = jax.lax.broadcasted_iota(jnp.int32, (b, V2), 0)
    cid2 = jax.lax.broadcasted_iota(jnp.int32, (b, V2), 1)
    flat2 = bid2 * (n * V2) + cid2           # p_l2 rows identical across n -> n=0
    g2 = jnp.max(p_row)
    pred2 = jnp.min(jnp.where(p_row == g2, flat2, big))
    acc2 = jnp.sum((l2 == pred2).astype(f32) * l2_mask2) / total_l2

    # ---- lane-dense packed output (single unmasked 128-lane store)
    lane = jax.lax.broadcasted_iota(jnp.int32, (1, 128), 1)
    out_ref[...] = (jnp.where(lane == 0, loss, 0.0)
                    + jnp.where(lane == 1, acc1, 0.0)
                    + jnp.where(lane == 2, acc2, 0.0))


# ------------------------------- wrapper ------------------------------------
def prepare_params(params):
    """One-time parameter packing (init-time, NOT in the per-step path)."""
    f32, bf16 = jnp.float32, jnp.bfloat16
    w_locsc = jnp.concatenate([params['w_loc'], params['w_scale']], axis=1)
    w12 = jnp.concatenate([params['w1'], params['w2']], axis=1)
    # 128-aligned bias slab: [b1 (128) | b2 (128) | b_loc (32) | b_scale (32)]
    bias = jnp.concatenate([params['b1'], params['b2'],
                            params['b_loc'], params['b_scale']], axis=1)
    return {
        'table': params['emb_table'].astype(bf16),   # MXU-fed one-hot gather
        'w_locsc': w_locsc.astype(bf16),             # [H_DIM, 2D]
        'w12': w12.astype(bf16),                     # [D, V1+V2]
        'bias': bias.astype(f32),                    # [1, V1+V2+2D]
    }


@jax.jit
def embedalign_forward(batch_l1, batch_l2, prep, epsilon):
    """Whole forward pass in one pallas_call. Returns the packed (1,128)
    block: lanes (0,1,2) = (loss, acc_l1, acc_l2)."""
    vmem = pltpu.MemorySpace.VMEM
    return pl.pallas_call(
        embedalign_kernel,
        out_shape=jax.ShapeDtypeStruct((1, 128), jnp.float32),
        in_specs=[pl.BlockSpec(memory_space=vmem)] * 7,
        out_specs=pl.BlockSpec(memory_space=vmem),
        # NOTE: for larger batches, add a leading "parallel" grid axis over
        # sentence chunks to use the second TensorCore on v7x.
    )(batch_l1.astype(jnp.int32), batch_l2.astype(jnp.int32),
      prep['table'], prep['w_locsc'], prep['w12'], prep['bias'],
      epsilon.astype(jnp.float32))


# ----------------------------- pure-JAX reference ----------------------------
def embedalign_reference(batch_l1, batch_l2, params, epsilon):
    f32 = jnp.float32
    emb = params['emb_table'][batch_l1].astype(f32)
    b, m, d = emb.shape
    n = batch_l2.shape[1]
    l1_mask = (batch_l1 > 0).astype(f32)
    l2_mask = (batch_l2 > 0).astype(f32)
    l1_len = jnp.sum(l1_mask, axis=1, keepdims=True)
    align = (l1_mask / l1_len)[:, None, :].repeat(n, axis=1)
    sums = jnp.sum(emb, axis=1, keepdims=True)
    ctx = (sums - emb) / (m - 1)
    h = jnp.concatenate([emb, ctx], axis=2)
    z_loc = h @ params['w_loc'] + params['b_loc']
    z_scale = jax.nn.softplus(h @ params['w_scale'] + params['b_scale'])
    z = z_loc + z_scale * epsilon[0]
    logits1 = z @ params['w1'] + params['b1']
    cat1 = jax.nn.softmax(logits1, axis=2)
    logits2 = z @ params['w2'] + params['b2']
    cat2 = jax.nn.softmax(logits2, axis=2)
    p_l2 = jnp.einsum('bnm,bmv->bnv', align, cat2)
    ce1 = -jnp.take_along_axis(jax.nn.log_softmax(logits1, -1),
                               batch_l1[..., None], axis=-1)[..., 0]
    ce1 = jnp.mean(ce1) * jnp.mean(jnp.sum(l1_mask, axis=1))
    ce2 = -jnp.take_along_axis(jax.nn.log_softmax(p_l2, -1),
                               batch_l2[..., None], axis=-1)[..., 0]
    ce2 = jnp.mean(ce2) * jnp.mean(jnp.sum(l2_mask, axis=1))
    z_var = z_scale ** 2
    kl = jnp.sum(-0.5 * (1 + jnp.log(z_var) - z_loc ** 2 - z_var), axis=2)
    kl = jnp.mean(jnp.sum(kl * l1_mask, axis=1))
    loss = ce1 + ce2 + kl
    pred1 = jnp.argmax(cat1)
    acc1 = jnp.sum((batch_l1 == pred1) * l1_mask) / jnp.sum(l1_mask)
    pred2 = jnp.argmax(p_l2)
    acc2 = jnp.sum((batch_l2 == pred2) * l2_mask) / jnp.sum(l2_mask)
    return loss, acc1, acc2


# --------------------------------- main --------------------------------------
if __name__ == "__main__":
    key = jax.random.PRNGKey(0)
    keys = jax.random.split(key, 12)

    def lin_w(k, fan_in, shape):
        bound = 1.0 / np.sqrt(fan_in)
        return jax.random.uniform(k, shape, jnp.float32, -bound, bound)

    params = {
        'emb_table': jax.random.normal(keys[0], (V1, D), jnp.float32),
        'w_loc':   lin_w(keys[1], H_DIM, (H_DIM, D)),
        'b_loc':   lin_w(keys[2], H_DIM, (1, D)),
        'w_scale': lin_w(keys[3], H_DIM, (H_DIM, D)),
        'b_scale': lin_w(keys[4], H_DIM, (1, D)),
        'w1':      lin_w(keys[5], D, (D, V1)),
        'b1':      lin_w(keys[6], D, (1, V1)),
        'w2':      lin_w(keys[7], D, (D, V2)),
        'b2':      lin_w(keys[8], D, (1, V2)),
    }

    batch_l1 = jax.random.randint(keys[9], (B, M), 1, V1).astype(jnp.int32)
    batch_l1 = batch_l1.at[1, M - 2:].set(0)              # padding
    batch_l2 = jax.random.randint(keys[10], (B, N), 1, V2).astype(jnp.int32)
    batch_l2 = batch_l2.at[0, N - 1:].set(0)              # padding

    # std-normal sample for the reparameterisation trick (MultivariateNormal)
    epsilon = jax.random.normal(keys[11], (1, D), jnp.float32)

    prep = prepare_params(params)                         # one-time packing

    packed = embedalign_forward(batch_l1, batch_l2, prep, epsilon)
    jax.block_until_ready(packed)
    loss, acc1, acc2 = packed[0, 0], packed[0, 1], packed[0, 2]

    ref = embedalign_reference(batch_l1, batch_l2, params, epsilon)
    np.testing.assert_allclose(np.array(loss), np.array(ref[0]), rtol=2e-2, atol=2e-2)
    np.testing.assert_allclose(np.array(acc1), np.array(ref[1]), rtol=2e-2, atol=2e-2)
    np.testing.assert_allclose(np.array(acc2), np.array(ref[2]), rtol=2e-2, atol=2e-2)
    assert np.isfinite(np.array(loss))

    print("KERNEL_OK")
</pallas_src>

<mosaic_0001>
module attributes {stable_mosaic.version = 11 : i64} {
  func.func @embedalign_kernel(%arg0: memref<2x8xi32, #tpu.memory_space<vmem>>, %arg1: memref<2x8xi32, #tpu.memory_space<vmem>>, %arg2: memref<128x32xbf16, #tpu.memory_space<vmem>>, %arg3: memref<64x64xbf16, #tpu.memory_space<vmem>>, %arg4: memref<32x256xbf16, #tpu.memory_space<vmem>>, %arg5: memref<1x320xf32, #tpu.memory_space<vmem>>, %arg6: memref<1x32xf32, #tpu.memory_space<vmem>>, %arg7: memref<1x128xf32, #tpu.memory_space<vmem>>) attributes {dimension_semantics = [], scalar_prefetch = 0 : i64, scratch_operands = 0 : i64, tpu.core_type = #tpu.core_type<tc>} {
    %c0 = arith.constant 0 : index
    %c0_0 = arith.constant 0 : index
    %0 = vector.load %arg0[%c0, %c0_0] : memref<2x8xi32, #tpu.memory_space<vmem>>, vector<2x8xi32>
    %c0_1 = arith.constant 0 : index
    %c0_2 = arith.constant 0 : index
    %1 = vector.load %arg1[%c0_1, %c0_2] : memref<2x8xi32, #tpu.memory_space<vmem>>, vector<2x8xi32>
    %c0_i32 = arith.constant 0 : i32
    %2 = vector.broadcast %c0_i32 : i32 to vector<2x8xi32>
    %3 = arith.cmpi sgt, %0, %2 : vector<2x8xi32>
    %4 = arith.extui %3 : vector<2x8xi1> to vector<2x8xi32>
    %5 = arith.sitofp %4 : vector<2x8xi32> to vector<2x8xf32>
    %c0_i32_3 = arith.constant 0 : i32
    %6 = vector.broadcast %c0_i32_3 : i32 to vector<2x8xi32>
    %7 = arith.cmpi sgt, %1, %6 : vector<2x8xi32>
    %8 = arith.extui %7 : vector<2x8xi1> to vector<2x8xi32>
    %9 = arith.sitofp %8 : vector<2x8xi32> to vector<2x8xf32>
    %10 = vector.shape_cast %5 : vector<2x8xf32> to vector<1x2x8xf32>
    %cst = arith.constant dense<0.000000e+00> : vector<1xf32>
    %11 = vector.multi_reduction <add>, %10, %cst [1, 2] : vector<1x2x8xf32> to vector<1xf32>
    %12 = vector.shape_cast %11 : vector<1xf32> to vector<1x1x1xf32>
    %13 = vector.extract %12[0, 0, 0] : f32 from vector<1x1x1xf32>
    %14 = vector.shape_cast %9 : vector<2x8xf32> to vector<1x2x8xf32>
    %cst_4 = arith.constant dense<0.000000e+00> : vector<1xf32>
    %15 = vector.multi_reduction <add>, %14, %cst_4 [1, 2] : vector<1x2x8xf32> to vector<1xf32>
    %16 = vector.shape_cast %15 : vector<1xf32> to vector<1x1x1xf32>
    %17 = vector.extract %16[0, 0, 0] : f32 from vector<1x1x1xf32>
    %cst_5 = arith.constant dense<0.000000e+00> : vector<2xf32>
    %18 = vector.multi_reduction <add>, %5, %cst_5 [1] : vector<2x8xf32> to vector<2xf32>
    %19 = vector.shape_cast %18 : vector<2xf32> to vector<2x1xf32>
    %20 = tpu.iota {dimensions = array<i32: 2>} : vector<2x8x128xi32>
    %21 = vector.shape_cast %0 : vector<2x8xi32> to vector<2x8x1xi32>
    %22 = vector.broadcast %21 : vector<2x8x1xi32> to vector<2x8x128xi32>
    %23 = arith.cmpi eq, %20, %22 : vector<2x8x128xi32>
    %24 = arith.extui %23 : vector<2x8x128xi1> to vector<2x8x128xi32>
    %25 = arith.sitofp %24 : vector<2x8x128xi32> to vector<2x8x128xf32>
    %26 = vector.shape_cast %25 : vector<2x8x128xf32> to vector<16x128xf32>
    %27 = arith.truncf %26 : vector<16x128xf32> to vector<16x128xbf16>
    %c0_6 = arith.constant 0 : index
    %c0_7 = arith.constant 0 : index
    %28 = vector.load %arg2[%c0_6, %c0_7] : memref<128x32xbf16, #tpu.memory_space<vmem>>, vector<128x32xbf16>
    %cst_8 = arith.constant dense<0.000000e+00> : vector<16x32xf32>
    %29 = tpu.matmul %27, %28, %cst_8 {dimension_numbers = #tpu.dot_dimension_numbers<[1], [0], [0], [1], [0, 0, 1, 1], [], []>} : vector<16x128xbf16>, vector<128x32xbf16>, vector<16x32xf32> -> vector<16x32xf32>
    %30 = vector.extract_strided_slice %26 {offsets = [0, 0], sizes = [16, 1], strides = [1, 1]} : vector<16x128xf32> to vector<16x1xf32>
    %cst_9 = arith.constant 1.000000e+00 : f32
    %31 = vector.broadcast %cst_9 : f32 to vector<16x1xf32>
    %32 = arith.subf %31, %30 : vector<16x1xf32>
    %33 = vector.shape_cast %29 : vector<16x32xf32> to vector<2x8x32xf32>
    %cst_10 = arith.constant dense<0.000000e+00> : vector<2x32xf32>
    %34 = vector.multi_reduction <add>, %33, %cst_10 [1] : vector<2x8x32xf32> to vector<2x32xf32>
    %35 = vector.shape_cast %34 : vector<2x32xf32> to vector<2x1x32xf32>
    %36 = vector.broadcast %35 : vector<2x1x32xf32> to vector<2x8x32xf32>
    %37 = arith.subf %36, %33 : vector<2x8x32xf32>
    %cst_11 = arith.constant 0.142857149 : f32
    %38 = vector.broadcast %cst_11 : f32 to vector<2x8x32xf32>
    %39 = arith.mulf %37, %38 : vector<2x8x32xf32>
    %40 = vector.shape_cast %39 : vector<2x8x32xf32> to vector<16x32xf32>
    %41 = tpu.concatenate %29, %40 in 1 : vector<16x32xf32>, vector<16x32xf32> -> vector<16x64xf32>
    %c0_12 = arith.constant 0 : index
    %c256 = arith.constant 256 : index
    %42 = vector.load %arg5[%c0_12, %c256] : memref<1x320xf32, #tpu.memory_space<vmem>>, vector<1x64xf32>
    %43 = arith.truncf %41 : vector<16x64xf32> to vector<16x64xbf16>
    %c0_13 = arith.constant 0 : index
    %c0_14 = arith.constant 0 : index
    %44 = vector.load %arg3[%c0_13, %c0_14] : memref<64x64xbf16, #tpu.memory_space<vmem>>, vector<64x64xbf16>
    %cst_15 = arith.constant dense<0.000000e+00> : vector<16x64xf32>
    %45 = tpu.matmul %43, %44, %cst_15 {dimension_numbers = #tpu.dot_dimension_numbers<[1], [0], [0], [1], [0, 0, 1, 1], [], []>} : vector<16x64xbf16>, vector<64x64xbf16>, vector<16x64xf32> -> vector<16x64xf32>
    %46 = vector.broadcast %42 : vector<1x64xf32> to vector<16x64xf32>
    %47 = arith.addf %45, %46 : vector<16x64xf32>
    %48 = vector.extract_strided_slice %47 {offsets = [0, 0], sizes = [16, 32], strides = [1, 1]} : vector<16x64xf32> to vector<16x32xf32>
    %49 = vector.extract_strided_slice %47 {offsets = [0, 32], sizes = [16, 32], strides = [1, 1]} : vector<16x64xf32> to vector<16x32xf32>
    %cst_16 = arith.constant 0.000000e+00 : f32
    %50 = vector.broadcast %cst_16 : f32 to vector<16x32xf32>
    %51 = arith.maximumf %49, %50 : vector<16x32xf32>
    %52 = vector.broadcast %cst_16 : f32 to vector<16x32xf32>
    %53 = arith.subf %49, %52 : vector<16x32xf32>
    %54 = arith.cmpf one, %53, %53 : vector<16x32xf32>
    %55 = vector.broadcast %cst_16 : f32 to vector<16x32xf32>
    %56 = arith.addf %49, %55 : vector<16x32xf32>
    %57 = math.absf %53 : vector<16x32xf32>
    %cst_17 = arith.constant 0.000000e+00 : f32
    %58 = vector.broadcast %cst_17 : f32 to vector<16x32xf32>
    %59 = arith.subf %58, %57 : vector<16x32xf32>
    %60 = math.exp %59 : vector<16x32xf32>
    %61 = math.log1p %60 : vector<16x32xf32>
    %62 = arith.addf %51, %61 : vector<16x32xf32>
    %63 = arith.select %54, %56, %62 : vector<16x32xi1>, vector<16x32xf32>
    %c0_18 = arith.constant 0 : index
    %c0_19 = arith.constant 0 : index
    %64 = vector.load %arg6[%c0_18, %c0_19] : memref<1x32xf32, #tpu.memory_space<vmem>>, vector<1x32xf32>
    %65 = vector.broadcast %64 : vector<1x32xf32> to vector<16x32xf32>
    %66 = arith.mulf %63, %65 : vector<16x32xf32>
    %67 = arith.addf %48, %66 : vector<16x32xf32>
    %c0_20 = arith.constant 0 : index
    %c0_21 = arith.constant 0 : index
    %68 = vector.load %arg5[%c0_20, %c0_21] : memref<1x320xf32, #tpu.memory_space<vmem>>, vector<1x256xf32>
    %69 = arith.truncf %67 : vector<16x32xf32> to vector<16x32xbf16>
    %c0_22 = arith.constant 0 : index
    %c0_23 = arith.constant 0 : index
    %70 = vector.load %arg4[%c0_22, %c0_23] : memref<32x256xbf16, #tpu.memory_space<vmem>>, vector<32x256xbf16>
    %cst_24 = arith.constant dense<0.000000e+00> : vector<16x256xf32>
    %71 = tpu.matmul %69, %70, %cst_24 {dimension_numbers = #tpu.dot_dimension_numbers<[1], [0], [0], [1], [0, 0, 1, 1], [], []>} : vector<16x32xbf16>, vector<32x256xbf16>, vector<16x256xf32> -> vector<16x256xf32>
    %72 = vector.broadcast %68 : vector<1x256xf32> to vector<16x256xf32>
    %73 = arith.addf %71, %72 : vector<16x256xf32>
    %74 = vector.extract_strided_slice %73 {offsets = [0, 0], sizes = [16, 128], strides = [1, 1]} : vector<16x256xf32> to vector<16x128xf32>
    %75 = vector.extract_strided_slice %73 {offsets = [0, 128], sizes = [16, 128], strides = [1, 1]} : vector<16x256xf32> to vector<16x128xf32>
    %cst_25 = arith.constant dense<0xFF800000> : vector<16xf32>
    %76 = vector.multi_reduction <maximumf>, %74, %cst_25 [1] : vector<16x128xf32> to vector<16xf32>
    %77 = vector.shape_cast %76 : vector<16xf32> to vector<16x1xf32>
    %78 = vector.broadcast %77 : vector<16x1xf32> to vector<16x128xf32>
    %79 = arith.subf %74, %78 : vector<16x128xf32>
    %80 = math.exp %79 : vector<16x128xf32>
    %81 = vector.broadcast %77 : vector<16x1xf32> to vector<16x128xf32>
    %82 = arith.subf %74, %81 : vector<16x128xf32>
    %cst_26 = arith.constant dense<0.000000e+00> : vector<16xf32>
    %83 = vector.multi_reduction <add>, %80, %cst_26 [1] : vector<16x128xf32> to vector<16xf32>
    %84 = vector.shape_cast %83 : vector<16xf32> to vector<16x1xf32>
    %85 = math.log %84 : vector<16x1xf32>
    %86 = vector.broadcast %85 : vector<16x1xf32> to vector<16x128xf32>
    %87 = arith.subf %82, %86 : vector<16x128xf32>
    %88 = arith.mulf %26, %87 : vector<16x128xf32>
    %cst_27 = arith.constant dense<0.000000e+00> : vector<16xf32>
    %89 = vector.multi_reduction <add>, %88, %cst_27 [1] : vector<16x128xf32> to vector<16xf32>
    %90 = vector.shape_cast %89 : vector<16xf32> to vector<16x1xf32>
    %cst_28 = arith.constant 0.000000e+00 : f32
    %91 = vector.broadcast %cst_28 : f32 to vector<16x1xf32>
    %92 = arith.subf %91, %90 : vector<16x1xf32>
    %93 = vector.shape_cast %92 : vector<16x1xf32> to vector<1x16x1xf32>
    %cst_29 = arith.constant dense<0.000000e+00> : vector<1xf32>
    %94 = vector.multi_reduction <add>, %93, %cst_29 [1, 2] : vector<1x16x1xf32> to vector<1xf32>
    %95 = vector.shape_cast %94 : vector<1xf32> to vector<1x1x1xf32>
    %96 = vector.extract %95[0, 0, 0] : f32 from vector<1x1x1xf32>
    %cst_30 = arith.constant 1.600000e+01 : f32
    %97 = arith.divf %96, %cst_30 : f32
    %98 = arith.mulf %97, %13 : f32
    %cst_31 = arith.constant 5.000000e-01 : f32
    %99 = arith.mulf %98, %cst_31 : f32
    %cst_32 = arith.constant dense<0xFF800000> : vector<16xf32>
    %100 = vector.multi_reduction <maximumf>, %75, %cst_32 [1] : vector<16x128xf32> to vector<16xf32>
    %101 = vector.shape_cast %100 : vector<16xf32> to vector<16x1xf32>
    %102 = vector.broadcast %101 : vector<16x1xf32> to vector<16x128xf32>
    %103 = arith.subf %75, %102 : vector<16x128xf32>
    %104 = math.exp %103 : vector<16x128xf32>
    %cst_33 = arith.constant dense<0.000000e+00> : vector<16xf32>
    %105 = vector.multi_reduction <add>, %104, %cst_33 [1] : vector<16x128xf32> to vector<16xf32>
    %106 = vector.shape_cast %105 : vector<16xf32> to vector<16x1xf32>
    %107 = vector.broadcast %106 : vector<16x1xf32> to vector<16x128xf32>
    %108 = arith.divf %104, %107 : vector<16x128xf32>
    %109 = vector.broadcast %32 : vector<16x1xf32> to vector<16x128xf32>
    %110 = arith.mulf %108, %109 : vector<16x128xf32>
    %111 = vector.shape_cast %110 : vector<16x128xf32> to vector<2x8x128xf32>
    %cst_34 = arith.constant dense<0.000000e+00> : vector<2x128xf32>
    %112 = vector.multi_reduction <add>, %111, %cst_34 [1] : vector<2x8x128xf32> to vector<2x128xf32>
    %113 = vector.broadcast %19 : vector<2x1xf32> to vector<2x128xf32>
    %114 = arith.divf %112, %113 : vector<2x128xf32>
    %cst_35 = arith.constant dense<0xFF800000> : vector<2xf32>
    %115 = vector.multi_reduction <maximumf>, %114, %cst_35 [1] : vector<2x128xf32> to vector<2xf32>
    %116 = vector.shape_cast %115 : vector<2xf32> to vector<2x1xf32>
    %117 = vector.broadcast %116 : vector<2x1xf32> to vector<2x128xf32>
    %118 = arith.subf %114, %117 : vector<2x128xf32>
    %119 = math.exp %118 : vector<2x128xf32>
    %120 = vector.broadcast %116 : vector<2x1xf32> to vector<2x128xf32>
    %121 = arith.subf %114, %120 : vector<2x128xf32>
    %cst_36 = arith.constant dense<0.000000e+00> : vector<2xf32>
    %122 = vector.multi_reduction <add>, %119, %cst_36 [1] : vector<2x128xf32> to vector<2xf32>
    %123 = vector.shape_cast %122 : vector<2xf32> to vector<2x1xf32>
    %124 = math.log %123 : vector<2x1xf32>
    %125 = vector.broadcast %124 : vector<2x1xf32> to vector<2x128xf32>
    %126 = arith.subf %121, %125 : vector<2x128xf32>
    %127 = tpu.iota {dimensions = array<i32: 2>} : vector<2x8x128xi32>
    %128 = vector.shape_cast %1 : vector<2x8xi32> to vector<2x8x1xi32>
    %129 = vector.broadcast %128 : vector<2x8x1xi32> to vector<2x8x128xi32>
    %130 = arith.cmpi eq, %127, %129 : vector<2x8x128xi32>
    %131 = arith.extui %130 : vector<2x8x128xi1> to vector<2x8x128xi32>
    %132 = arith.sitofp %131 : vector<2x8x128xi32> to vector<2x8x128xf32>
    %cst_37 = arith.constant dense<0.000000e+00> : vector<2x128xf32>
    %133 = vector.multi_reduction <add>, %132, %cst_37 [1] : vector<2x8x128xf32> to vector<2x128xf32>
    %134 = arith.mulf %133, %126 : vector<2x128xf32>
    %135 = vector.shape_cast %134 : vector<2x128xf32> to vector<1x2x128xf32>
    %cst_38 = arith.constant dense<0.000000e+00> : vector<1xf32>
    %136 = vector.multi_reduction <add>, %135, %cst_38 [1, 2] : vector<1x2x128xf32> to vector<1xf32>
    %137 = vector.shape_cast %136 : vector<1xf32> to vector<1x1x1xf32>
    %138 = vector.extract %137[0, 0, 0] : f32 from vector<1x1x1xf32>
    %cst_39 = arith.constant 0.000000e+00 : f32
    %139 = arith.subf %cst_39, %138 : f32
    %cst_40 = arith.constant 6.250000e-02 : f32
    %140 = arith.mulf %139, %cst_40 : f32
    %141 = arith.mulf %140, %17 : f32
    %cst_41 = arith.constant 5.000000e-01 : f32
    %142 = arith.mulf %141, %cst_41 : f32
    %143 = arith.mulf %63, %63 : vector<16x32xf32>
    %144 = math.log %143 : vector<16x32xf32>
    %cst_42 = arith.constant 1.000000e+00 : f32
    %145 = vector.broadcast %cst_42 : f32 to vector<16x32xf32>
    %146 = arith.addf %145, %144 : vector<16x32xf32>
    %147 = arith.mulf %48, %48 : vector<16x32xf32>
    %148 = arith.subf %146, %147 : vector<16x32xf32>
    %149 = arith.subf %148, %143 : vector<16x32xf32>
    %cst_43 = arith.constant -5.000000e-01 : f32
    %150 = vector.broadcast %cst_43 : f32 to vector<16x32xf32>
    %151 = arith.mulf %150, %149 : vector<16x32xf32>
    %cst_44 = arith.constant dense<0.000000e+00> : vector<16xf32>
    %152 = vector.multi_reduction <add>, %151, %cst_44 [1] : vector<16x32xf32> to vector<16xf32>
    %153 = vector.shape_cast %152 : vector<16xf32> to vector<16x1xf32>
    %154 = arith.mulf %153, %32 : vector<16x1xf32>
    %155 = vector.shape_cast %154 : vector<16x1xf32> to vector<1x16x1xf32>
    %cst_45 = arith.constant dense<0.000000e+00> : vector<1xf32>
    %156 = vector.multi_reduction <add>, %155, %cst_45 [1, 2] : vector<1x16x1xf32> to vector<1xf32>
    %157 = vector.shape_cast %156 : vector<1xf32> to vector<1x1x1xf32>
    %158 = vector.extract %157[0, 0, 0] : f32 from vector<1x1x1xf32>
    %cst_46 = arith.constant 5.000000e-01 : f32
    %159 = arith.mulf %158, %cst_46 : f32
    %160 = arith.addf %99, %142 : f32
    %161 = arith.addf %160, %159 : f32
    %162 = tpu.iota {dimensions = array<i32: 0>} : vector<16x128xi32>
    %163 = tpu.iota {dimensions = array<i32: 1>} : vector<16x128xi32>
    %c128_i32 = arith.constant 128 : i32
    %164 = vector.broadcast %c128_i32 : i32 to vector<16x128xi32>
    %165 = arith.muli %162, %164 : vector<16x128xi32>
    %166 = arith.addi %165, %163 : vector<16x128xi32>
    %167 = vector.shape_cast %87 : vector<16x128xf32> to vector<1x16x128xf32>
    %cst_47 = arith.constant dense<0xFF800000> : vector<1xf32>
    %168 = vector.multi_reduction <maximumf>, %167, %cst_47 [1, 2] : vector<1x16x128xf32> to vector<1xf32>
    %169 = vector.shape_cast %168 : vector<1xf32> to vector<1x1x1xf32>
    %170 = vector.extract %169[0, 0, 0] : f32 from vector<1x1x1xf32>
    %171 = vector.broadcast %170 : f32 to vector<16x128xf32>
    %172 = arith.cmpf oeq, %87, %171 : vector<16x128xf32>
    %c1073741824_i32 = arith.constant 1073741824 : i32
    %173 = vector.broadcast %c1073741824_i32 : i32 to vector<16x128xi32>
    %174 = arith.select %172, %166, %173 : vector<16x128xi1>, vector<16x128xi32>
    %175 = vector.shape_cast %174 : vector<16x128xi32> to vector<1x16x128xi32>
    %cst_48 = arith.constant dense<2147483647> : vector<1xi32>
    %176 = vector.multi_reduction <minsi>, %175, %cst_48 [1, 2] : vector<1x16x128xi32> to vector<1xi32>
    %177 = vector.shape_cast %176 : vector<1xi32> to vector<1x1x1xi32>
    %178 = vector.extract %177[0, 0, 0] : i32 from vector<1x1x1xi32>
    %179 = vector.broadcast %178 : i32 to vector<2x8xi32>
    %180 = arith.cmpi eq, %0, %179 : vector<2x8xi32>
    %181 = arith.extui %180 : vector<2x8xi1> to vector<2x8xi32>
    %182 = arith.sitofp %181 : vector<2x8xi32> to vector<2x8xf32>
    %183 = arith.mulf %182, %5 : vector<2x8xf32>
    %184 = vector.shape_cast %183 : vector<2x8xf32> to vector<1x2x8xf32>
    %cst_49 = arith.constant dense<0.000000e+00> : vector<1xf32>
    %185 = vector.multi_reduction <add>, %184, %cst_49 [1, 2] : vector<1x2x8xf32> to vector<1xf32>
    %186 = vector.shape_cast %185 : vector<1xf32> to vector<1x1x1xf32>
    %187 = vector.extract %186[0, 0, 0] : f32 from vector<1x1x1xf32>
    %188 = arith.divf %187, %13 : f32
    %189 = tpu.iota {dimensions = array<i32: 0>} : vector<2x128xi32>
    %190 = tpu.iota {dimensions = array<i32: 1>} : vector<2x128xi32>
    %c1024_i32 = arith.constant 1024 : i32
    %191 = vector.broadcast %c1024_i32 : i32 to vector<2x128xi32>
    %192 = arith.muli %189, %191 : vector<2x128xi32>
    %193 = arith.addi %192, %190 : vector<2x128xi32>
    %194 = vector.shape_cast %114 : vector<2x128xf32> to vector<1x2x128xf32>
    %cst_50 = arith.constant dense<0xFF800000> : vector<1xf32>
    %195 = vector.multi_reduction <maximumf>, %194, %cst_50 [1, 2] : vector<1x2x128xf32> to vector<1xf32>
    %196 = vector.shape_cast %195 : vector<1xf32> to vector<1x1x1xf32>
    %197 = vector.extract %196[0, 0, 0] : f32 from vector<1x1x1xf32>
    %198 = vector.broadcast %197 : f32 to vector<2x128xf32>
    %199 = arith.cmpf oeq, %114, %198 : vector<2x128xf32>
    %c1073741824_i32_51 = arith.constant 1073741824 : i32
    %200 = vector.broadcast %c1073741824_i32_51 : i32 to vector<2x128xi32>
    %201 = arith.select %199, %193, %200 : vector<2x128xi1>, vector<2x128xi32>
    %202 = vector.shape_cast %201 : vector<2x128xi32> to vector<1x2x128xi32>
    %cst_52 = arith.constant dense<2147483647> : vector<1xi32>
    %203 = vector.multi_reduction <minsi>, %202, %cst_52 [1, 2] : vector<1x2x128xi32> to vector<1xi32>
    %204 = vector.shape_cast %203 : vector<1xi32> to vector<1x1x1xi32>
    %205 = vector.extract %204[0, 0, 0] : i32 from vector<1x1x1xi32>
    %206 = vector.broadcast %205 : i32 to vector<2x8xi32>
    %207 = arith.cmpi eq, %1, %206 : vector<2x8xi32>
    %208 = arith.extui %207 : vector<2x8xi1> to vector<2x8xi32>
    %209 = arith.sitofp %208 : vector<2x8xi32> to vector<2x8xf32>
    %210 = arith.mulf %209, %9 : vector<2x8xf32>
    %211 = vector.shape_cast %210 : vector<2x8xf32> to vector<1x2x8xf32>
    %cst_53 = arith.constant dense<0.000000e+00> : vector<1xf32>
    %212 = vector.multi_reduction <add>, %211, %cst_53 [1, 2] : vector<1x2x8xf32> to vector<1xf32>
    %213 = vector.shape_cast %212 : vector<1xf32> to vector<1x1x1xf32>
    %214 = vector.extract %213[0, 0, 0] : f32 from vector<1x1x1xf32>
    %215 = arith.divf %214, %17 : f32
    %216 = tpu.iota {dimensions = array<i32: 1>} : vector<1x128xi32>
    %c0_i32_54 = arith.constant 0 : i32
    %217 = vector.broadcast %c0_i32_54 : i32 to vector<1x128xi32>
    %218 = arith.cmpi eq, %216, %217 : vector<1x128xi32>
    %cst_55 = arith.constant 0.000000e+00 : f32
    %219 = vector.broadcast %161 : f32 to vector<1x128xf32>
    %220 = vector.broadcast %cst_55 : f32 to vector<1x128xf32>
    %221 = arith.select %218, %219, %220 : vector<1x128xi1>, vector<1x128xf32>
    %c1_i32 = arith.constant 1 : i32
    %222 = vector.broadcast %c1_i32 : i32 to vector<1x128xi32>
    %223 = arith.cmpi eq, %216, %222 : vector<1x128xi32>
    %cst_56 = arith.constant 0.000000e+00 : f32
    %224 = vector.broadcast %188 : f32 to vector<1x128xf32>
    %225 = vector.broadcast %cst_56 : f32 to vector<1x128xf32>
    %226 = arith.select %223, %224, %225 : vector<1x128xi1>, vector<1x128xf32>
    %227 = arith.addf %221, %226 : vector<1x128xf32>
    %c2_i32 = arith.constant 2 : i32
    %228 = vector.broadcast %c2_i32 : i32 to vector<1x128xi32>
    %229 = arith.cmpi eq, %216, %228 : vector<1x128xi32>
    %cst_57 = arith.constant 0.000000e+00 : f32
    %230 = vector.broadcast %215 : f32 to vector<1x128xf32>
    %231 = vector.broadcast %cst_57 : f32 to vector<1x128xf32>
    %232 = arith.select %229, %230, %231 : vector<1x128xi1>, vector<1x128xf32>
    %233 = arith.addf %227, %232 : vector<1x128xf32>
    %c0_58 = arith.constant 0 : index
    %c0_59 = arith.constant 0 : index
    %234 = vector.load %arg7[%c0_58, %c0_59] : memref<1x128xf32, #tpu.memory_space<vmem>>, vector<1x128xf32>
    tpu.vector_store %arg7[%c0_58, %c0_59], %233 {strides = array<i32>} : memref<1x128xf32, #tpu.memory_space<vmem>>, vector<1x128xf32>,
    return
  }
}

</mosaic_0001>

<bundles_post_ra>
// kernel: embedalign_forward.1
= control target key start
LH: loop header
LB: loop body
LE: loop exit
PB: predicated region body
PF: predicated region fallthrough
CT: control target
= control target key end

     0   :  { %v57_v0 = vlaneseq  ;;  %v1027_v2 = vmov 0.0   ;;  %vm1028_vm0 = vmmov 0   ;;  %s1362_s0 = inlined_call_operand.vmem [shape: s32[2,8], index: 0, kind: input, shape index: {}]   ;;  %s1363_s1 = inlined_call_operand.vmem [shape: s32[2,8], index: 1, kind: input, shape index: {}]   ;;  %s1364_s2 = inlined_call_operand.vmem [shape: bf16[128,32], index: 2, kind: input, shape index: {}]   ;;  %s1365_s3 = inlined_call_operand.vmem [shape: bf16[64,64], index: 3, kind: input, shape index: {}]   ;;  %s1366_s4 = inlined_call_operand.vmem [shape: bf16[32,256], index: 4, kind: input, shape index: {}]   ;;  %s1367_s5 = inlined_call_operand.vmem [shape: f32[1,320], index: 5, kind: input, shape index: {}]   ;;  %s1368_s6 = inlined_call_operand.vmem [shape: f32[1,32], index: 6, kind: input, shape index: {}]   ;;  %s1369_s7 = inlined_call_operand.hbm [shape: f32[1,128], index: 7, kind: output, shape index: {}]  }
   0x1   :  { %v943_v1 = vld [vmem:[%s1364_s2] sm:$0xff]   ;;  %871 = vmatprep.subr.bf16.mxu0 %v1027_v2  ;;  %891 = vmatprep.subr.bf16.mxu1 %v1027_v2  ;;  %v944_v5 = vld [vmem:[%s1364_s2 + $0x8] sm:$0xff]   ;;  %v945_v9 = vld [vmem:[%s1364_s2 + $0x10] sm:$0xff]  }
   0x2   :  { %v1082_v3 = vld [vmem:[%s1362_s0] sm:$0x3]  ;;  %v1084_v4 = vshrl.u32 %v57_v0, 7  ;;  %872 = vmatpush3.bf16.msra.mxu0 %v943_v1  ;;  %887 = vmatprep.mubr.msk.bf16.mxu0 %vm1028_vm0, %v1027_v2  ;;  %v946_v11 = vld [vmem:[%s1364_s2 + $0x18] sm:$0xff]  }
   0x3   :  { %873 = vmatprep.subr.bf16.mxu0 %v1027_v2  ;;  %899 = vmatprep.mubr.msk.bf16.mxu1 %vm1028_vm0, %v1027_v2 }
   0x4   :  { %v1091_v6 = vsub.s32 0, %v1084_v4  ;;  %v1094_v7 = vsub.s32 1, %v1084_v4 }
   0x6   :  { %v62_v8 = vrot.slane %v1082_v3, %v1091_v6  ;;  %874 = vmatpush3.bf16.msra.mxu0 %v944_v5  ;;  %v69_v10 = vrot.slane %v1082_v3, %v1094_v7 }
   0x7   :  { %875 = vmatprep.subr.bf16.mxu0 %v1027_v2 }
   0x8   :  { %64 = vbcast.lane.b32.xlu0 %v62_v8, 256 }
   0xa   :  { %876 = vmatpush3.bf16.msra.mxu0 %v945_v9 }
   0xb   :  { %877 = vmatprep.subr.bf16.mxu0 %v1027_v2 }
   0xc   :  { %71 = vbcast.lane.b32.xlu0 %v69_v10, 256 }
   0xd   :  { %12 = vsyncpa [#allocation3], 0  ;;  %v947_v12 = vld [vmem:[%s1364_s2 + $0x20] sm:$0xff]   ;;  %v948_v13 = vld [vmem:[%s1364_s2 + $0x28] sm:$0xff]   ;;  %v1128_v17 = vand.u32 127, %v57_v0  ;;  %vm187_vm4 = vcmask 261120  }
   0xe   :  { %878 = vmatpush3.bf16.msra.mxu0 %v946_v11  ;;  %v949_v14 = vld [vmem:[%s1364_s2 + $0x30] sm:$0xff]   ;;  %v950_v15 = vld [vmem:[%s1364_s2 + $0x38] sm:$0xff]   ;;  %v1029_v19 = vmov 1.0|1.0   ;;  %v951_v20 = vld [vmem:[%s1365_s3] sm:$0xff]   ;;  %s1030_s25 = smov 32  }
   0xf   :  { %879 = vmatprep.subr.bf16.mxu0 %v1027_v2  ;;  %892 = vmatpush3.bf16.msra.mxu1 %v951_v20  ;;  %v952_v21 = vld [vmem:[%s1365_s3 + $0x8] sm:$0xff]   ;;  %v953_v22 = vld [vmem:[%s1365_s3 + $0x10] sm:$0xff]   ;;  %v954_v36 = vld [vmem:[%s1365_s3 + $0x18] sm:$0xff]   ;;  %vm256_vm5 = vcmask 523264   ;;  %vm30_vm10 = vcmp.gt.s32.totalorder %v1082_v3, 0  ;;  %vm36_vm11 = vcmask 58368  }
  0x10   :  { %893 = vmatprep.subr.bf16.mxu1 %v1027_v2  ;;  %v847_v47 = vld [vmem:[%s1368_s6] ss:$0 sm:$0xff]  ;;  %v957_v55 = vld [vmem:[%s1366_s4 + $0x4] ss:$8 sps:$4 sm:$0xff]   ;;  %v841_v56 = vld [vmem:[%s1367_s5 + $0x2] ss:$0 sm:$0xff] }
  0x11   :  { %v955_v54 = vld [vmem:[%s1366_s4] ss:$8 sps:$4 sm:$0xff]   ;;  %v960_v20 = vld [vmem:[%s1366_s4 + $0x14] ss:$8 sps:$4 sm:$0xff]   ;;  %vm540_vm12 = vcmask 1041409   ;;  %vm543_vm13 = vcmask 1041408  }
  0x12   :  { %880 = vmatpush3.bf16.msra.mxu0 %v947_v12  ;;  %vm469_vm15 = vcmask 7168  }
  0x13   :  { %881 = vmatprep.subr.bf16.mxu0 %v1027_v2  ;;  %894 = vmatpush3.bf16.msra.mxu1 %v952_v21 }
  0x14   :  { %895 = vmatprep.subr.bf16.mxu1 %v1027_v2 }
  0x16   :  { %882 = vmatpush3.bf16.msra.mxu0 %v948_v13 }
  0x17   :  { %883 = vmatprep.subr.bf16.mxu0 %v1027_v2  ;;  %896 = vmatpush3.bf16.msra.mxu1 %v953_v22 }
  0x18   :  { %897 = vmatprep.subr.bf16.mxu1 %v1027_v2 }
  0x1a   :  { %884 = vmatpush3.bf16.msra.mxu0 %v949_v14 }
  0x1b   :  { %885 = vmatprep.subr.bf16.mxu0 %v1027_v2  ;;  %898 = vmatpush3.bf16.msra.mxu1 %v954_v36 }
  0x1c   :  { %398 = vmatprep.subr.bf16.mxu1 %v957_v55  ;;  %v1213_v55 = vsel %vm30_vm10, 1.0, %v1027_v2  ;;  %vm750_vm10 = vcmask 1040384  }
  0x1e   :  { %886 = vmatpush3.bf16.msra.mxu0 %v950_v15 }
  0x7a   :  { %v1126_v16 = vpop.permute.xlu0 %64 }
  0x7b   :  { %vm73_vm1 = vcmp.eq.s32.totalorder %v1128_v17, %v1126_v16 }
  0x7e   :  { %v1130_v18 = vpop.permute.xlu0 %71 }
  0x7f   :  { %vm74_vm2 = vcmp.eq.s32.totalorder %v1128_v17, %v1130_v18 }
  0x80   :  { %vm839_vm3 = vmpackc.low %vm74_vm2, %vm73_vm1 }
  0x81   :  { %888 = vmatmul.mubr.msk.bf16.vlgmr.msra.gmra.mrb[0].mxu0 %vm839_vm3, %v1029_v19  ;;  %v958_v19 = vld [vmem:[%s1366_s4 + $0x10] ss:$8 sps:$4 sm:$0xff]   ;;  %s1032_s4 = smov 96  }
 0x154   :  { %v178_v23 = vpop.f32.mrb[0].mxu0 }
 0x155   :  { %v188_v24 = vsel %vm187_vm4, %v178_v23, 0.0  ;;  %v889_v25 = vpop.f32.mrb[1].mxu0 }
 0x156   :  { %v189_v26 = vrot.slane %v188_v24, 4  ;;  %v181_v27 = vpop.f32.mrb[2].mxu0 }
 0x157   :  { %v195_v28 = vsel %vm187_vm4, %v181_v27, 0.0  ;;  %v890_v29 = vpop.f32.mrb[3].mxu0 }
 0x158   :  { %v190_v30 = vadd.f32 %v189_v26, %v188_v24  ;;  %v196_v31 = vrot.slane %v195_v28, 4 }
 0x15a   :  { %v191_v32 = vrot.slane %v190_v30, 2  ;;  %v197_v33 = vadd.f32 %v196_v31, %v195_v28  ;;  %v1031_v28 = vmov 0  }
 0x15b   :  { %942 = vset.pattern.permute.xlu1 %v1031_v28  ;;  %941 = vset.pattern.permute.xlu0 %v1031_v28 }
 0x15c   :  { %v192_v34 = vadd.f32 %v191_v32, %v190_v30  ;;  %v198_v35 = vrot.slane %v197_v33, 2 }
 0x15e   :  { %v193_v37 = vrot.slane %v192_v34, 1  ;;  %v199_v38 = vadd.f32 %v198_v35, %v197_v33 }
 0x160   :  { %v194_v39 = vadd.f32 %v193_v37, %v192_v34  ;;  %v200_v40 = vrot.slane %v199_v38, 1 }
 0x162   :  { %v202_v41 = vsub.f32 %v194_v39, %v178_v23  ;;  %v201_v42 = vadd.f32 %v200_v40, %v199_v38 }
 0x164   :  { %v203_v43 = vsub.f32 %v201_v42, %v181_v27  ;;  %v204_v44 = vmul.f32 0.14285715, %v202_v41 }
 0x166   :  { %v205_v45 = vmul.f32 0.14285715, %v203_v43 }
 0x168   :  { %v936_v46 = vpack.i.bf16 %v205_v45, %v204_v44 }
 0x16a   :  { %937 = vrot.lane.b32.xlu1 %v936_v46, %s1030_s25 }
 0x16e   :  { %343 = vrot.lane.b32.xlu1 %v847_v47, %s1030_s25 }
 0x1dc   :  { %v938_v48 = vpop.permute.xlu1 %937 }
 0x1dd   :  { %v940_v49 = vunpack.i.h.bf16 %v938_v48  ;;  %v939_v50 = vunpack.i.l.bf16 %v938_v48  ;;  %v358_v48 = vld [vmem:[%s1367_s5] sm:$0x3] }
 0x1df   :  { %v215_v51 = vsel %vm187_vm4, %v181_v27, %v940_v49  ;;  %v214_v52 = vsel %vm187_vm4, %v178_v23, %v939_v50  ;;  %v372_v49 = vrot.slane %v358_v48, %v1094_v7 }
 0x1e0   :  { %v217_v53 = vpack.c.bf16 %v215_v51, %v214_v52  ;;  %v344_v34 = vpop.permute.xlu1 %343  ;;  %v368_v51 = vrot.slane %v358_v48, %v1091_v6 }
 0x1e2   :  { %900 = vmatmul.mubr.msk.bf16.vlgmr.msra.gmra.mrb[0].mxu1 %vm256_vm5, %v217_v53 }
 0x1e3   :  { %399 = vmatpush1.bf16.msra.mxu1 %v955_v54  ;;  %430 = vmatprep.mubr.bf16.mxu1 %v1031_v28 }
 0x1e4   :  { %400 = vmatprep.subr.bf16.mxu1 %v960_v20 }
 0x1e7   :  { %401 = vmatpush1.bf16.msra.mxu1 %v958_v19 }
 0x2b5   :  { %v294_v57 = vpop.f32.mrb[0].mxu1 }
 0x2b6   :  { %v1175_v58 = vadd.f32 %v841_v56, %v294_v57  ;;  %v901_v59 = vpop.f32.mrb[1].mxu1 }
 0x2b7   :  { %v297_v60 = vpop.f32.mrb[2].mxu1 }
 0x2b8   :  { %v307_v61 = vand.u32 2147483647, %v1175_v58  ;;  %v1178_v62 = vadd.f32 %v841_v56, %v297_v60  ;;  %v902_v63 = vpop.f32.mrb[3].mxu1  ;;  %v301_v30 = vmax.f32 %v1175_v58, 0.0  ;;  %vm303_vm8 = vcmp.ne.f32.partialorder %v1175_v58, %v1175_v58 }
 0x2b9   :  { %v37_v60 = vsel %vm36_vm11, %v1213_v55, 0.0 }
 0x2ba   :  { %v309_v0 = vsub.f32 0.0, %v307_v61  ;;  %v308_v1 = vand.u32 2147483647, %v1178_v62  ;;  %v302_v35 = vmax.f32 %v1178_v62, 0.0  ;;  %vm304_vm9 = vcmp.ne.f32.partialorder %v1178_v62, %v1178_v62 }
 0x2bb   :  { %v1223_v61 = vsel %vm73_vm1, 1.0, %v1027_v2 }
 0x2bc   :  { %v311_v5 = vmul.f32 1.442695, %v309_v0  ;;  %v310_v8 = vsub.f32 0.0, %v308_v1  ;;  %v185_v63 = vsub.f32 1.0, %v1223_v61  ;;  %v634_v1 = vmul.f32 %v1175_v58, %v1175_v58 }
 0x2be   :  { %961 = vpow2.f32 %v311_v5  ;;  %v313_v9 = vmul.f32 1.442695, %v310_v8  ;;  %v635_v5 = vmul.f32 %v1178_v62, %v1178_v62 }
 0x2c0   :  { %963 = vpow2.f32 %v313_v9 }
 0x2c8   :  { %v962_v10 = vpop.eup %961 }
 0x2c9   :  { %v315_v11 = vadd.f32 1.0, %v962_v10  ;;  %v318_v14 = vmul.f32 -0.5, %v962_v10  ;;  %v321_v22 = vand.u32 2147483647, %v962_v10 }
 0x2ca   :  { %v964_v12 = vpop.eup %963 }
 0x2cb   :  { %965 = vlog2.f32 %v315_v11  ;;  %v324_v13 = vadd.f32 1.0, %v964_v12  ;;  %v327_v15 = vmul.f32 -0.5, %v964_v12  ;;  %v319_v21 = vadd.f32 1.0, %v318_v14 }
 0x2cc   :  { %v330_v25 = vand.u32 2147483647, %v964_v12  ;;  %vm322_vm6 = vcmp.lt.f32.partialorder %v321_v22, 0.0004427343 }
 0x2cd   :  { %967 = vlog2.f32 %v324_v13  ;;  %v328_v23 = vadd.f32 1.0, %v327_v15  ;;  %v320_v27 = vmul.f32 %v962_v10, %v319_v21 }
 0x2ce   :  { %vm331_vm7 = vcmp.lt.f32.partialorder %v330_v25, 0.0004427343 }
 0x2cf   :  { %v329_v33 = vmul.f32 %v964_v12, %v328_v23 }
 0x2d5   :  { %v966_v24 = vpop.eup %965 }
 0x2d6   :  { %v317_v26 = vmul.f32 0.6931472, %v966_v24 }
 0x2d7   :  { %v968_v29 = vpop.eup %967 }
 0x2d8   :  { %v323_v31 = vsel %vm322_vm6, %v320_v27, %v317_v26  ;;  %v326_v32 = vmul.f32 0.6931472, %v968_v29  ;;  %v1250_v29 = vld [vmem:[%s1363_s1] sm:$0x3] }
 0x2d9   :  { %v333_v36 = vadd.f32 %v323_v31, %v301_v30  ;;  %v583_v30 = vrot.slane %v1250_v29, %v1094_v7  ;;  %vm33_vm14 = vcmp.gt.s32.totalorder %v1250_v29, 0 }
 0x2da   :  { %v332_v37 = vsel %vm331_vm7, %v329_v33, %v326_v32 }
 0x2db   :  { %v334_v38 = vadd.f32 %v332_v37, %v302_v35  ;;  %v1192_v39 = vsel %vm303_vm8, %v1175_v58, %v333_v36 }
 0x2dc   :  { %v346_v40 = vmul.f32 %v344_v34, %v1192_v39 }
 0x2dd   :  { %v1198_v41 = vsel %vm304_vm9, %v1178_v62, %v334_v38 }
 0x2de   :  { %v347_v42 = vmul.f32 %v344_v34, %v1198_v41  ;;  %350 = vrot.lane.b32.xlu0 %v346_v40, %s1032_s4 }
 0x2e0   :  { %352 = vrot.lane.b32.xlu1 %v347_v42, %s1032_s4 }
 0x350   :  { %v351_v43 = vpop.permute.xlu0 %350 }
 0x351   :  { %v356_v45 = vadd.f32 %v351_v43, %v1175_v58  ;;  %v1238_v58 = vsel %vm74_vm2, 1.0, %v1027_v2 }
 0x352   :  { %v353_v44 = vpop.permute.xlu1 %352 }
 0x353   :  { %v357_v46 = vadd.f32 %v353_v44, %v1178_v62  ;;  %v186_v62 = vsub.f32 1.0, %v1238_v58 }
 0x355   :  { %v359_v47 = vpack.c.bf16 %v357_v46, %v356_v45 }
 0x357   :  { %852 = vmatmul.mubr.msk.bf16.vlgmr.msra.gmra.mrb[4].mxu1 %vm187_vm4, %v359_v47 }
 0x42a   :  { %v432_v50 = vpop.f32.mrb[4].mxu1 }
 0x42b   :  { %v434_v52 = vpop.f32.mrb[5].mxu1  ;;  %v433_v0 = vadd.f32 %v432_v50, %v368_v51 }
 0x42c   :  { %v435_v53 = vadd.f32 %v434_v52, %v372_v49  ;;  %v436_v54 = vpop.f32.mrb[6].mxu1 }
 0x42d   :  { %v1215_v56 = vadd.f32 %v436_v54, %v368_v51  ;;  %v438_v57 = vpop.f32.mrb[7].mxu1 }
 0x42e   :  { %v439_v59 = vadd.f32 %v438_v57, %v372_v49  ;;  %487 = vmax.xlane.f32.xlu1 %v435_v53 }
 0x430   :  { %489 = vmax.xlane.f32.xlu0 %v439_v59 }
 0x432   :  { %38 = vadd.xlane.f32.xlu1 %v37_v60 }
 0x443   :  { %507 = vperm.xlu1 %942, %v185_v63  }
 0x467   :  { %441 = vmax.xlane.f32.xlu1 %v433_v0 }
 0x478   :  { %638 = vrot.lane.b32.xlu1 %v634_v1, %s1030_s25 }
 0x47c   :  { %640 = vrot.lane.b32.xlu1 %v635_v5, %s1030_s25 }
 0x4bb   :  { %v488_v16 = vpop.xlane.xlu1 %487 }
 0x4bc   :  { %v491_v8 = vsub.f32 %v435_v53, %v488_v16 }
 0x4bd   :  { %v490_v9 = vpop.xlane.xlu0 %489 }
 0x4be   :  { %v493_v10 = vmul.f32 1.442695, %v491_v8  ;;  %v492_v11 = vsub.f32 %v439_v59, %v490_v9 }
 0x4bf   :  { %v39_v15 = vpop.xlane.xlu1 %38 }
 0x4c0   :  { %969 = vpow2.f32 %v493_v10  ;;  %v495_v12 = vmul.f32 1.442695, %v492_v11  ;;  %v40_v19 = vrot.slane %v39_v15, 4  ;;  %v530_v37 = vrot.slane %v39_v15, 1 }
 0x4c2   :  { %971 = vpow2.f32 %v495_v12  ;;  %v41_v22 = vadd.f32 %v40_v19, %v39_v15 }
 0x4c3   :  { %v508_v20 = vpop.permute.xlu1 %507 }
 0x4c4   :  { %v42_v24 = vrot.slane %v41_v22, 2 }
 0x4c6   :  { %v43_v26 = vadd.f32 %v42_v24, %v41_v22 }
 0x4c8   :  { %v44_v18 = vrot.slane %v43_v26, 1 }
 0x4ca   :  { %v970_v13 = vpop.eup %969  ;;  %v45_v27 = vadd.f32 %v44_v18, %v43_v26 }
 0x4cb   :  { %497 = vadd.xlane.f32.xlu0 %v970_v13 }
 0x4cc   :  { %v972_v14 = vpop.eup %971  ;;  %903 = vpush %v45_v27 }
 0x4cf   :  { %499 = vadd.xlane.f32.xlu0 %v972_v14 }
 0x4e5   :  { %512 = vperm.xlu0 %941, %v186_v62  }
 0x4f4   :  { %v442_v21 = vpop.xlane.xlu1 %441 }
 0x4f5   :  { %v1243_v23 = vsub.f32 %v433_v0, %v442_v21 }
 0x4f7   :  { %v447_v25 = vmul.f32 1.442695, %v1243_v23 }
 0x4f8   :  { %v639_v16 = vpop.permute.xlu1 %638 }
 0x4f9   :  { %973 = vpow2.f32 %v447_v25 }
 0x4fc   :  { %v641_v8 = vpop.permute.xlu1 %640 }
 0x4fd   :  { %s1312_s1 = spop %903 }
 0x503   :  { %v974_v28 = vpop.eup %973 }
 0x504   :  { %443 = vmax.xlane.f32.xlu0 %v1215_v56  ;;  %451 = vadd.xlane.f32.xlu1 %v974_v28 }
 0x515   :  { %585 = vbcast.lane.b32.xlu1 %v583_v30, 256 }
 0x558   :  { %v498_v31 = vpop.xlane.xlu0 %497 }
 0x559   :  { %975 = vrcp.f32 %v498_v31 }
 0x55c   :  { %v500_v32 = vpop.xlane.xlu0 %499 }
 0x55d   :  { %977 = vrcp.f32 %v500_v32 }
 0x55e   :  { %979 = vrcp.f32 %v530_v37 }
 0x55f   :  { %981 = vrcp.f32 %v39_v15 }
 0x563   :  { %v976_v33 = vpop.eup %975 }
 0x564   :  { %v502_v34 = vmul.f32 %v976_v33, %v970_v13  ;;  %v513_v42 = vpop.permute.xlu0 %512  ;;  %v626_v13 = vmul.f32 %v1192_v39, %v1192_v39 }
 0x566   :  { %v515_v35 = vmul.f32 %v508_v20, %v502_v34 }
 0x567   :  { %v978_v36 = vpop.eup %977 }
 0x568   :  { %v517_v38 = vrot.slane %v515_v35, 4  ;;  %v504_v40 = vmul.f32 %v978_v36, %v972_v14  ;;  %v980_v52 = vpop.eup %979  ;;  %v627_v14 = vmul.f32 %v1198_v41, %v1198_v41 }
 0x569   :  { %v982_v57 = vpop.eup %981 }
 0x56a   :  { %v516_v43 = vmul.f32 %v513_v42, %v504_v40  ;;  %v518_v44 = vadd.f32 %v517_v38, %v515_v35 }
 0x56c   :  { %v523_v45 = vrot.slane %v516_v43, 4  ;;  %v519_v46 = vrot.slane %v518_v44, 2 }
 0x56e   :  { %v524_v7 = vadd.f32 %v523_v45, %v516_v43  ;;  %v520_v47 = vadd.f32 %v519_v46, %v518_v44 }
 0x570   :  { %v525_v48 = vrot.slane %v524_v7, 2  ;;  %v521_v50 = vrot.slane %v520_v47, 1 }
 0x572   :  { %v526_v49 = vadd.f32 %v525_v48, %v524_v7  ;;  %v522_v54 = vadd.f32 %v521_v50, %v520_v47 }
 0x574   :  { %v527_v51 = vrot.slane %v526_v49, 1  ;;  %v1256_v60 = vmul.f32 %v982_v57, %v522_v54  ;;  %v576_v57 = vrot.slane %v1250_v29, %v1091_v6 }
 0x576   :  { %v528_v53 = vadd.f32 %v527_v51, %v526_v49 }
 0x578   :  { %v1254_v59 = vmul.f32 %v980_v52, %v528_v53  ;;  %v1292_v53 = vsel %vm33_vm14, 1.0, %v1027_v2 }
 0x579   :  { %v47_v54 = vsel %vm36_vm11, %v1292_v53, 0.0 }
 0x57a   :  { %v539_v0 = vrot.slane %v1254_v59, 7 }
 0x57c   :  { %v541_v1 = vsel %vm540_vm12, %v539_v0, %v1256_v60 }
 0x57d   :  { %v544_v5 = vsel %vm543_vm13, %v541_v1, -inf }
 0x57e   :  { %545 = vmax.xlane.f32.xlu0 %v544_v5 }
 0x591   :  { %v444_v9 = vpop.xlane.xlu0 %443  ;;  %v452_v10 = vpop.xlane.xlu1 %451 }
 0x592   :  { %v446_v11 = vsub.f32 %v1215_v56, %v444_v9  ;;  %983 = vlog2.f32 %v452_v10 }
 0x594   :  { %v449_v12 = vmul.f32 1.442695, %v446_v11 }
 0x595   :  { %v586_v0 = vpop.permute.xlu1 %585 }
 0x596   :  { %985 = vpow2.f32 %v449_v12  ;;  %vm588_vm0 = vcmp.eq.s32.totalorder %v1128_v17, %v586_v0 }
 0x597   :  { %987 = vlog2.f32 %v626_v13 }
 0x598   :  { %989 = vlog2.f32 %v627_v14 }
 0x59c   :  { %v984_v15 = vpop.eup %983 }
 0x59d   :  { %v456_v19 = vmul.f32 0.6931472, %v984_v15 }
 0x59f   :  { %v1268_v20 = vsub.f32 %v1243_v23, %v456_v19 }
 0x5a0   :  { %v986_v21 = vpop.eup %985 }
 0x5a1   :  { %453 = vadd.xlane.f32.xlu0 %v986_v21  ;;  %v461_v56 = vmul.f32 %v1223_v61, %v1268_v20  ;;  %v988_v22 = vpop.eup %987 }
 0x5a2   :  { %v629_v24 = vmul.f32 0.6931472, %v988_v22  ;;  %v990_v39 = vpop.eup %989 }
 0x5a3   :  { %463 = vadd.xlane.f32.xlu1 %v461_v56  ;;  %v631_v26 = vmul.f32 0.6931472, %v990_v39 }
 0x5a4   :  { %v632_v25 = vadd.f32 1.0, %v629_v24 }
 0x5a5   :  { %v633_v41 = vadd.f32 1.0, %v631_v26 }
 0x5a6   :  { %v644_v18 = vsub.f32 %v632_v25, %v639_v16 }
 0x5a7   :  { %v645_v28 = vsub.f32 %v633_v41, %v641_v8  ;;  %48 = vadd.xlane.f32.xlu1 %v47_v54 }
 0x5a8   :  { %v646_v27 = vsub.f32 %v644_v18, %v626_v13  ;;  %v854_v13 = vsel %vm588_vm0, 1.0, %v1027_v2 }
 0x5a9   :  { %v647_v31 = vsub.f32 %v645_v28, %v627_v14  ;;  %v599_v6 = vrot.slane %v854_v13, 4 }
 0x5aa   :  { %v648_v30 = vmul.f32 -0.5, %v646_v27 }
 0x5ab   :  { %v649_v23 = vmul.f32 -0.5, %v647_v31  ;;  %v600_v22 = vadd.f32 %v854_v13, %v599_v6 }
 0x5ad   :  { %v601_v25 = vrot.slane %v600_v22, 2 }
 0x5af   :  { %v602_v28 = vadd.f32 %v601_v25, %v600_v22 }
 0x5b7   :  { %652 = vrot.lane.b32.xlu0 %v648_v30, %s1032_s4 }
 0x5bb   :  { %654 = vrot.lane.b32.xlu0 %v649_v23, %s1032_s4  ;;  %v603_v23 = vrot.slane %v602_v28, 1  ;;  %s1033_s4 = smov [#allocation2]  }
 0x5bc   :  { %s819_s12 = sshll.u32 %s1033_s4, 4  ;;  %s820_s12 = int_to_ptr.vmem [resolvable:$true] %s819_s12 }
 0x5bd   :  { %s1003_s13 = scalar_lea.vmem %s820_s12, 16  ;;  %s1007_s5 = scalar_lea.vmem %s820_s12, 32 }
 0x5be   :  { %p1004_p0 = scmp.ne.s32.totalorder %s820_s12, %s1003_s13  ;;  %p1008_p1 = scmp.lt.s32.totalorder %s820_s12, %s820_s12 }
 0x5bf   :  { %p1009_p2 = scmp.lt.s32.totalorder %s1007_s5, %s1003_s13 }
 0x5c1   :  { %p1010_p3 = por %p1009_p2, %p1008_p1 }
 0x5c3   :  { %p1011_p4 = pnand %p1010_p3, %p1004_p0 }
 0x60b   :  { %v546_v32 = vpop.xlane.xlu0 %545 }
 0x60c   :  { %v548_v33 = vrot.slane %v546_v32, 1  ;;  %v1279_v37 = vsub.f32 %v1256_v60, %v546_v32 }
 0x60e   :  { %v1275_v35 = vsub.f32 %v1254_v59, %v548_v33  ;;  %v553_v40 = vmul.f32 1.442695, %v1279_v37 }
 0x610   :  { %v555_v36 = vmul.f32 1.442695, %v1275_v35 }
 0x62e   :  { %v454_v34 = vpop.xlane.xlu0 %453 }
 0x62f   :  { %991 = vlog2.f32 %v454_v34 }
 0x630   :  { %993 = vpow2.f32 %v555_v36  ;;  %v464_v1 = vpop.xlane.xlu1 %463 }
 0x631   :  { %995 = vpow2.f32 %v553_v40  ;;  %v467_v5 = vsub.f32 0.0, %v464_v1  ;;  %v604_v40 = vadd.f32 %v603_v23, %v602_v28 }
 0x632   :  { %v653_v44 = vpop.permute.xlu0 %652 }
 0x633   :  { %v658_v7 = vsel %vm187_vm4, %v653_v44, 0.0  ;;  %v470_v9 = vsel %vm469_vm15, %v467_v5, 0.0 }
 0x634   :  { %v49_v18 = vpop.xlane.xlu1 %48 }
 0x635   :  { %v50_v41 = vrot.slane %v49_v18, 4 }
 0x636   :  { %v655_v47 = vpop.permute.xlu0 %654 }
 0x637   :  { %v661_v50 = vsel %vm187_vm4, %v655_v47, 0.0  ;;  %v51_v27 = vadd.f32 %v50_v41, %v49_v18 }
 0x639   :  { %v992_v38 = vpop.eup %991  ;;  %v52_v31 = vrot.slane %v51_v27, 2 }
 0x63a   :  { %v458_v42 = vmul.f32 0.6931472, %v992_v38  ;;  %v994_v46 = vpop.eup %993 }
 0x63b   :  { %v559_v48 = vrot.slane %v994_v46, 7  ;;  %v996_v49 = vpop.eup %995  ;;  %v53_v38 = vadd.f32 %v52_v31, %v51_v27  ;;  %v684_v27 = vmul.u32 128, %v1084_v4 }
 0x63c   :  { %v1282_v43 = vsub.f32 %v446_v11, %v458_v42 }
 0x63d   :  { %v560_v51 = vsel %vm540_vm12, %v559_v48, %v996_v49  ;;  %v54_v46 = vrot.slane %v53_v38, 1 }
 0x63e   :  { %v462_v45 = vmul.f32 %v1238_v58, %v1282_v43  ;;  %v562_v52 = vsel %vm543_vm13, %v560_v51, 0.0 }
 0x63f   :  { %v55_v48 = vadd.f32 %v54_v46, %v53_v38 }
 0x640   :  { %465 = vadd.xlane.f32.xlu0 %v462_v45 }
 0x641   :  { %905 = vpush %v55_v48 }
 0x644   :  { %659 = vadd.xlane.f32.xlu0 %v658_v7 }
 0x648   :  { %662 = vadd.xlane.f32.xlu0 %v661_v50 }
 0x64c   :  { %563 = vadd.xlane.f32.xlu0 %v562_v52  ;;  %v688_v52 = vmax.f32 %v1268_v20, %v1282_v43 }
 0x662   :  { %578 = vbcast.lane.b32.xlu0 %v576_v57, 256 }
 0x672   :  { %s1314_s15 = spop %905 }
 0x6cd   :  { %v466_v16 = vpop.xlane.xlu0 %465 }
 0x6ce   :  { %v468_v8 = vsub.f32 0.0, %v466_v16 }
 0x6d0   :  { %v471_v10 = vsel %vm469_vm15, %v468_v8, 0.0 }
 0x6d1   :  { %v660_v11 = vpop.xlane.xlu0 %659  ;;  %v472_v12 = vadd.f32 %v471_v10, %v470_v9 }
 0x6d2   :  { %v664_v14 = vmul.f32 %v660_v11, %v185_v63 }
 0x6d3   :  { %473 = vadd.xlane.f32.xlu1 %v472_v12 }
 0x6d4   :  { %v666_v21 = vsel %vm469_vm15, %v664_v14, 0.0 }
 0x6d5   :  { %v663_v15 = vpop.xlane.xlu0 %662 }
 0x6d6   :  { %v665_v19 = vmul.f32 %v663_v15, %v186_v62 }
 0x6d8   :  { %v667_v56 = vsel %vm469_vm15, %v665_v19, 0.0 }
 0x6d9   :  { %v564_v24 = vpop.xlane.xlu0 %563  ;;  %v668_v39 = vadd.f32 %v667_v56, %v666_v21 }
 0x6da   :  { %997 = vlog2.f32 %v564_v24 }
 0x6db   :  { %669 = vadd.xlane.f32.xlu0 %v668_v39 }
 0x6dd   :  { %v579_v26 = vpop.permute.xlu0 %578 }
 0x6de   :  { %vm587_vm1 = vcmp.eq.s32.totalorder %v1128_v17, %v579_v26 }
 0x6df   :  { %v853_v61 = vsel %vm587_vm1, 1.0, %v1027_v2 }
 0x6e0   :  { %v593_v63 = vrot.slane %v853_v61, 4 }
 0x6e2   :  { %v594_v58 = vadd.f32 %v853_v61, %v593_v63  ;;  %v683_v63 = vadd.s32 8, %v1084_v4 }
 0x6e4   :  { %v998_v62 = vpop.eup %997  ;;  %v595_v30 = vrot.slane %v594_v58, 2  ;;  %v685_v28 = vmul.u32 128, %v683_v63 }
 0x6e5   :  { %v566_v32 = vmul.f32 0.6931472, %v998_v62 }
 0x6e6   :  { %v596_v33 = vadd.f32 %v595_v30, %v594_v58  ;;  %v686_v58 = vadd.s32 %v684_v27, %v1128_v17  ;;  %v687_v62 = vadd.s32 %v685_v28, %v1128_v17 }
 0x6e7   :  { %v568_v34 = vrot.slane %v566_v32, 1  ;;  %v571_v44 = vsub.f32 %v1279_v37, %v566_v32 }
 0x6e8   :  { %v597_v36 = vrot.slane %v596_v33, 1 }
 0x6e9   :  { %v572_v42 = vsub.f32 %v1275_v35, %v568_v34 }
 0x6ea   :  { %v598_v45 = vadd.f32 %v597_v36, %v596_v33 }
 0x6eb   :  { %v606_v7 = vmul.f32 %v604_v40, %v572_v42 }
 0x6ec   :  { %v605_v47 = vmul.f32 %v598_v45, %v571_v44 }
 0x6ed   :  { %v609_v49 = vrot.slane %v606_v7, 7 }
 0x6ef   :  { %v610_v50 = vsel %vm540_vm12, %v609_v49, %v605_v47  ;;  %vm801_vm12 = vcmp.eq.s32.totalorder %v1128_v17, 0 }
 0x6f0   :  { %v612_v51 = vsel %vm543_vm13, %v610_v50, 0.0  ;;  %vm804_vm13 = vcmp.eq.s32.totalorder %v1128_v17, 1 }
 0x6f1   :  { %613 = vadd.xlane.f32.xlu1 %v612_v51 }
 0x6f5   :  { %689 = vmax.xlane.f32.xlu1 %v688_v52 }
 0x760   :  { %v474_v54 = vpop.xlane.xlu1 %473 }
 0x761   :  { %v475_v35 = vrot.slane %v474_v54, 4 }
 0x763   :  { %v476_v57 = vadd.f32 %v475_v35, %v474_v54 }
 0x765   :  { %v477_v37 = vrot.slane %v476_v57, 2 }
 0x767   :  { %v478_v0 = vadd.f32 %v477_v37, %v476_v57  ;;  %v752_v37 = vsel %vm750_vm10, %v1254_v59, -inf }
 0x768   :  { %v670_v16 = vpop.xlane.xlu0 %669 }
 0x769   :  { %v479_v1 = vrot.slane %v478_v0, 1  ;;  %v671_v8 = vrot.slane %v670_v16, 4 }
 0x76b   :  { %v480_v5 = vadd.f32 %v479_v1, %v478_v0  ;;  %v672_v9 = vadd.f32 %v671_v8, %v670_v16  ;;  %v751_v0 = vsel %vm750_vm10, %v1256_v60, -inf }
 0x76c   :  { %v753_v1 = vmax.f32 %v751_v0, %v752_v37 }
 0x76d   :  { %907 = vpush %v480_v5  ;;  %v673_v10 = vrot.slane %v672_v9, 2  ;;  %v744_v5 = vstv %s1312_s1 }
 0x76e   :  { %999 = vrcp.f32 %v744_v5 }
 0x76f   :  { %v674_v14 = vadd.f32 %v673_v10, %v672_v9 }
 0x771   :  { %v675_v22 = vrot.slane %v674_v14, 1 }
 0x773   :  { %v676_v18 = vadd.f32 %v675_v22, %v674_v14  ;;  %v748_v14 = vmul.u32 1024, %v1084_v4 }
 0x77e   :  { %v614_v11 = vpop.xlane.xlu1 %613 }
 0x77f   :  { %v615_v12 = vrot.slane %v614_v11, 4 }
 0x781   :  { %v616_v13 = vadd.f32 %v615_v12, %v614_v11  ;;  %v1000_v12 = vpop.eup %999 }
 0x782   :  { %v690_v6 = vpop.xlane.xlu1 %689 }
 0x783   :  { %v617_v15 = vrot.slane %v616_v13, 2  ;;  %v691_v19 = vrot.slane %v690_v6, 4 }
 0x785   :  { %v692_v21 = vmax.f32 %v690_v6, %v691_v19  ;;  %v618_v56 = vadd.f32 %v617_v15, %v616_v13  ;;  %v749_v6 = vadd.s32 %v748_v14, %v1128_v17 }
 0x787   :  { %v693_v24 = vrot.slane %v692_v21, 2  ;;  %v619_v39 = vrot.slane %v618_v56, 1  ;;  %v760_v15 = vrot.slane %v749_v6, 1 }
 0x789   :  { %v620_v25 = vadd.f32 %v619_v39, %v618_v56  ;;  %v694_v26 = vmax.f32 %v692_v21, %v693_v24 }
 0x78b   :  { %909 = vpush %v620_v25  ;;  %v695_v41 = vrot.slane %v694_v26, 1 }
 0x78c   :  { %911 = vpush %v676_v18 }
 0x78d   :  { %v696_v61 = vmax.f32 %v694_v26, %v695_v41 }
 0x78f   :  { %913 = vpush %v696_v61 }
 0x79e   :  { %s908_s16 = spop %907 }
 0x79f   :  { %s484_s17 = smul.f32 0.0625, %s908_s16 }
 0x7a1   :  { %s485_s19 = smul.f32 %s1312_s1, %s484_s17 }
 0x7a3   :  { %s486_s24 = smul.f32 0.5, %s485_s19 }
 0x7bc   :  { %s910_s2 = spop %909 }
 0x7bd   :  { %s622_s18 = ssub.f32 0.0, %s910_s2  ;;  %s912_s21 = spop %911 }
 0x7be   :  { %s678_s26 = smul.f32 0.5, %s912_s21 }
 0x7bf   :  { %s623_s20 = smul.f32 0.0625, %s622_s18 }
 0x7c0   :  { %s914_s22 = spop %913 }
 0x7c1   :  { %s624_s23 = smul.f32 %s1314_s15, %s623_s20  ;;  %v698_v30 = vstv %s914_s22 }
 0x7c2   :  { %vm699_vm2 = vcmp.eq.f32.partialorder %v1268_v20, %v698_v30  ;;  %vm700_vm3 = vcmp.eq.f32.partialorder %v1282_v43, %v698_v30 }
 0x7c3   :  { %s625_s25 = smul.f32 0.5, %s624_s23  ;;  %v701_v31 = vsel %vm699_vm2, %v686_v58, 1073741824  ;;  %v702_v23 = vsel %vm700_vm3, %v687_v62, 1073741824  ;;  %vm808_vm3 = vcmp.eq.s32.totalorder %v1128_v17, 2 }
 0x7c4   :  { %vm703_vm4 = vcmp.lt.s32.totalorder %v701_v31, %v702_v23 }
 0x7c5   :  { %s679_s27 = sadd.f32 %s625_s25, %s486_s24  ;;  %v704_v32 = vsel %vm703_vm4, %v701_v31, %v702_v23 }
 0x7c6   :  { %v706_v33 = vshra.s32 %v704_v32, 16  ;;  %v705_v36 = vand.u32 65535, %v704_v32 }
 0x7c7   :  { %s1324_s3 = sadd.f32 %s679_s27, %s678_s26 }
 0x7c8   :  { %v708_v34 = vcvt.s32.f32 %v706_v33  ;;  %v707_v40 = vcvt.s32.f32 %v705_v36 }
 0x7c9   :  { %v802_v19 = vstv %s1324_s3 }
 0x7ca   :  { %709 = vmin.xlane.f32.xlu1 %v708_v34  ;;  %v803_v22 = vsel %vm801_vm12, %v802_v19, 0.0 }
 0x857   :  { %v710_v38 = vpop.xlane.xlu1 %709 }
 0x858   :  { %vm711_vm5 = vcmp.eq.f32.partialorder %v708_v34, %v710_v38  ;;  %v716_v20 = vcvt.f32.s32 %v710_v38  ;;  %v797_v38 = vstv %s1314_s15 }
 0x859   :  { %v712_v42 = vsel %vm711_vm5, %v707_v40, inf  ;;  %1001 = vrcp.f32 %v797_v38 }
 0x85a   :  { %713 = vmin.xlane.f32.xlu1 %v712_v42  ;;  %v717_v44 = vshll.u32 %v716_v20, 16 }
 0x8e7   :  { %v714_v43 = vpop.xlane.xlu1 %713 }
 0x8e8   :  { %v715_v45 = vcvt.f32.s32 %v714_v43 }
 0x8ea   :  { %v718_v46 = vadd.s32 %v717_v44, %v715_v45 }
 0x8ec   :  { %v719_v7 = vrot.slane %v718_v46, 4 }
 0x8ee   :  { %vm720_vm6 = vcmp.lt.s32.totalorder %v718_v46, %v719_v7 }
 0x8ef   :  { %v721_v47 = vsel %vm720_vm6, %v718_v46, %v719_v7  ;;  %v1002_v7 = vpop.eup %1001 }
 0x8f0   :  { %v722_v48 = vrot.slane %v721_v47, 2 }
 0x8f2   :  { %vm723_vm7 = vcmp.lt.s32.totalorder %v721_v47, %v722_v48 }
 0x8f3   :  { %v724_v49 = vsel %vm723_vm7, %v721_v47, %v722_v48 }
 0x8f4   :  { %v725_v50 = vrot.slane %v724_v49, 1 }
 0x8f6   :  { %vm726_vm8 = vcmp.lt.s32.totalorder %v724_v49, %v725_v50 }
 0x8f7   :  { %v727_v51 = vsel %vm726_vm8, %v724_v49, %v725_v50 }
 0x8f8   :  { %915 = vpush %v727_v51 }
 0x929   :  { %s916_s28 = spop %915 }
 0x92a   :  { %v729_v52 = vstv %s916_s28 }
 0x92b   :  { %vm730_vm9 = vcmp.eq.s32.totalorder %v1082_v3, %v729_v52 }
 0x92c   :  { %v855_v54 = vsel %vm730_vm9, 1.0, %v1027_v2 }
 0x92d   :  { %v733_v35 = vmul.f32 %v855_v54, %v1213_v55 }
 0x92f   :  { %v734_v57 = vsel %vm36_vm11, %v733_v35, 0.0 }
 0x930   :  { %735 = vadd.xlane.f32.xlu1 %v734_v57 }
 0x934   :  { %754 = vmax.xlane.f32.xlu1 %v753_v1 }
 0x9bd   :  { %v736_v16 = vpop.xlane.xlu1 %735 }
 0x9be   :  { %v737_v8 = vrot.slane %v736_v16, 4 }
 0x9c0   :  { %v738_v3 = vadd.f32 %v737_v8, %v736_v16 }
 0x9c1   :  { %v755_v13 = vpop.xlane.xlu1 %754 }
 0x9c2   :  { %v739_v9 = vrot.slane %v738_v3, 2 }
 0x9c4   :  { %v740_v55 = vadd.f32 %v739_v9, %v738_v3 }
 0x9c6   :  { %v741_v10 = vrot.slane %v740_v55, 1 }
 0x9c8   :  { %v742_v11 = vadd.f32 %v741_v10, %v740_v55 }
 0x9ca   :  { %917 = vpush %v742_v11 }
 0x9cb   :  { %919 = vpush %v1000_v12 }
 0x9cc   :  { %921 = vpush %v755_v13 }
 0x9fb   :  { %s918_s29 = spop %917 }
 0x9fc   :  { %s920_s0 = spop %919 }
 0x9fd   :  { %s747_s6 = smul.f32 %s920_s0, %s918_s29  ;;  %s922_s30 = spop %921 }
 0x9fe   :  { %v757_v21 = vstv %s922_s30 }
 0x9ff   :  { %v805_v56 = vstv %s747_s6  ;;  %vm758_vm14 = vcmp.eq.f32.partialorder %v1256_v60, %v757_v21  ;;  %vm759_vm15 = vcmp.eq.f32.partialorder %v1254_v59, %v757_v21 }
 0xa00   :  { %v806_v4 = vsel %vm804_vm13, %v805_v56, 0.0  ;;  %v761_v24 = vsel %vm758_vm14, %v749_v6, 1073741824  ;;  %v762_v39 = vsel %vm759_vm15, %v760_v15, 1073741824 }
 0xa01   :  { %v807_v25 = vadd.f32 %v806_v4, %v803_v22  ;;  %v763_v26 = vsel %vm750_vm10, %v761_v24, 2147483647  ;;  %v764_v18 = vsel %vm750_vm10, %v762_v39, 2147483647 }
 0xa02   :  { %vm765_vm0 = vcmp.lt.s32.totalorder %v763_v26, %v764_v18 }
 0xa03   :  { %v766_v41 = vsel %vm765_vm0, %v763_v26, %v764_v18 }
 0xa04   :  { %v768_v61 = vshra.s32 %v766_v41, 16  ;;  %v767_v27 = vand.u32 65535, %v766_v41 }
 0xa06   :  { %v770_v63 = vcvt.s32.f32 %v768_v61  ;;  %v769_v58 = vcvt.s32.f32 %v767_v27 }
 0xa08   :  { %771 = vmin.xlane.f32.xlu1 %v770_v63 }
 0xa95   :  { %v772_v28 = vpop.xlane.xlu1 %771 }
 0xa96   :  { %vm773_vm1 = vcmp.eq.f32.partialorder %v770_v63, %v772_v28  ;;  %v778_v60 = vcvt.f32.s32 %v772_v28 }
 0xa97   :  { %v774_v59 = vsel %vm773_vm1, %v769_v58, inf }
 0xa98   :  { %775 = vmin.xlane.f32.xlu1 %v774_v59  ;;  %v779_v30 = vshll.u32 %v778_v60, 16 }
 0xb25   :  { %v776_v62 = vpop.xlane.xlu1 %775 }
 0xb26   :  { %v777_v31 = vcvt.f32.s32 %v776_v62 }
 0xb28   :  { %v780_v23 = vadd.s32 %v779_v30, %v777_v31 }
 0xb2a   :  { %923 = vpush %v780_v23 }
 0xb5b   :  { %s924_s8 = spop %923 }
 0xb5c   :  { %v782_v32 = vstv %s924_s8 }
 0xb5d   :  { %vm783_vm2 = vcmp.eq.s32.totalorder %v1250_v29, %v782_v32 }
 0xb5e   :  { %v856_v33 = vsel %vm783_vm2, 1.0, %v1027_v2 }
 0xb5f   :  { %v786_v34 = vmul.f32 %v856_v33, %v1292_v53 }
 0xb61   :  { %v787_v36 = vsel %vm36_vm11, %v786_v34, 0.0 }
 0xb62   :  { %788 = vadd.xlane.f32.xlu1 %v787_v36 }
 0xbef   :  { %v789_v40 = vpop.xlane.xlu1 %788 }
 0xbf0   :  { %v790_v42 = vrot.slane %v789_v40, 4 }
 0xbf2   :  { %v791_v20 = vadd.f32 %v790_v42, %v789_v40 }
 0xbf4   :  { %v792_v43 = vrot.slane %v791_v20, 2 }
 0xbf6   :  { %v793_v44 = vadd.f32 %v792_v43, %v791_v20 }
 0xbf8   :  { %v794_v45 = vrot.slane %v793_v44, 1 }
 0xbfa   :  { %v795_v46 = vadd.f32 %v794_v45, %v793_v44 }
 0xbfc   :  { %925 = vpush %v795_v46 }
 0xbfd   :  { %927 = vpush %v1002_v7 }
 0xc2d   :  { %s926_s9 = spop %925 }
 0xc2e   :  { %s928_s10 = spop %927 }
 0xc2f   :  { %s800_s11 = smul.f32 %s928_s10, %s926_s9 }
 0xc31   :  { %v809_v2 = vstv %s800_s11 }
 0xc32   :  { %v810_v29 = vsel %vm808_vm3, %v809_v2, 0.0 }
 0xc33   :  { %v811_v53 = vadd.f32 %v810_v29, %v807_v25 }
 0xc35   :  { %812 = vst [vmem:[#allocation2] sm:$0x1] %v811_v53 }
 0xc36   :  { %1014 = shalt.err (!%p1011_p4)
}
 0xc37   :  { %s1015_s15 = scalar_lea.hbm %s1369_s7, 16 }
 0xc38   :  { %p1016_p5 = scmp.ne.s32.totalorder %s1369_s7, %s1015_s15  ;;  %p1019_p6 = scmp.lt.u32.totalorder %s1015_s15, %s1369_s7 }
 0xc3a   :  { %p1021_p7 = pnand %p1019_p6, %p1016_p5 }
 0xc3c   :  { %1024 = shalt.err (!%p1021_p7)
}
 0xc3d   :  { %822 = dma.vmem_to_hbm [thread:$0]  %s820_s12, 16, %s1369_s7, [#allocation3]  }
 0xc3e   :  { %1025 = dma.done.wait [#allocation3], 16  }
 0xc3f   :  { %1026 = vsyncadd [#allocation3], 4294967280 }
 0xc40   :  { %826 = vsyncpa [#allocation3], 1 }

</bundles_post_ra>
